<compile_context>
chip_gen: v5e
topology: v5e:2x2
jax: 0.10.0
libtpu: 0.0.40
codegen_flags: <defaults>
</compile_context>

<pallas_src>
import functools

import jax
import jax.numpy as jnp
from jax import lax
from jax.experimental import pallas as pl
from jax.experimental.pallas import tpu as pltpu


_VMEM_LIMIT_BYTES = 64 * 1024 * 1024      # scoped VMEM limit (safe on v5e/v6e/v7x)
_VMEM_BUDGET_BYTES = 24 * 1024 * 1024     # budget for pipelined blocks (leave headroom)


def _pick_tiles(c, hw, itemsize, n_streams):
    """Pick (channel_tile, hw_tile) respecting the (8, 128) layout rule.

    n_streams = number of x-sized blocks live per grid step (input + outputs);
    each is double-buffered by the pipeline, hence the 2x in the budget.
    """
    budget = max(_VMEM_BUDGET_BYTES // (2 * max(n_streams, 1)),
                 8 * 128 * itemsize)

    # HW tile candidates: multiples of 128 dividing HW, or the full extent.
    if hw % 128 == 0:
        hw_cands = [k for k in range(128, hw + 1, 128) if hw % k == 0]
    else:
        hw_cands = [hw]                    # full extent is always a legal block dim
    # Channel tile candidates: multiples of 8 dividing C, or the full extent.
    if c % 8 == 0:
        ct_cands = [k for k in range(8, c + 1, 8) if c % k == 0]
    else:
        ct_cands = [c]

    min_ct = ct_cands[0]
    hw_t = hw_cands[0]
    for cand in hw_cands:                  # prefer the largest lane-dense HW tile
        if min_ct * cand * itemsize <= budget:
            hw_t = cand
    ct = ct_cands[0]
    for cand in ct_cands:                  # then the largest channel tile that fits
        if cand * hw_t * itemsize <= budget:
            ct = cand
    return ct, hw_t


def _bn_stats_kernel(x_ref, sum_ref, sumsq_ref):
    # x_ref: (Ct, HWt); sum_ref / sumsq_ref: (Ct, 1) resident f32 accumulators.
    first = jnp.logical_and(pl.program_id(1) == 0, pl.program_id(2) == 0)
    x = x_ref[...].astype(jnp.float32)
    s = jnp.sum(x, axis=1, keepdims=True)
    sq = jnp.sum(x * x, axis=1, keepdims=True)

    @pl.when(first)
    def _():
        sum_ref[...] = s
        sumsq_ref[...] = sq

    @pl.when(jnp.logical_not(first))
    def _():
        sum_ref[...] = sum_ref[...] + s
        sumsq_ref[...] = sumsq_ref[...] + sq


def _make_apply_kernel(n_tasks):
    def kernel(x_ref, scale_ref, shift_ref, *out_refs):
        # x_ref: (Ct, HWt); scale_ref / shift_ref: (Ct, T); out_refs[t]: (Ct, HWt)
        x = x_ref[...].astype(jnp.float32)
        scale = scale_ref[...]
        shift = shift_ref[...]
        for t in range(n_tasks):
            y = x * scale[:, t:t + 1] + shift[:, t:t + 1]
            out_refs[t][...] = y.astype(out_refs[t].dtype)
    return kernel


@functools.partial(jax.jit, static_argnames=("eps",))
def batch_norm2d_multi(x_nchw, gammas, betas, eps=1e-5):
    """Training-mode BatchNorm2d: shared batch stats, T fused affine heads.

    x_nchw : (N, C, H, W)
    gammas : (T, C)
    betas  : (T, C)
    returns: list of T arrays of shape (N, C, H, W)
    """
    n, c, h, w = x_nchw.shape
    hw = h * w
    n_tasks = gammas.shape[0]

    # Free, contiguous reshape — no transpose, no extra HBM traffic.
    x3 = x_nchw.reshape(n, c, hw)
    itemsize = jnp.dtype(x3.dtype).itemsize

    # ---- Pass 1: per-channel sum and sum-of-squares (reduce over N, HW) ----
    ct_s, hw_s = _pick_tiles(c, hw, itemsize, n_streams=1)
    sums, sumsqs = pl.pallas_call(
        _bn_stats_kernel,
        out_shape=(jax.ShapeDtypeStruct((c, 1), jnp.float32),
                   jax.ShapeDtypeStruct((c, 1), jnp.float32)),
        grid=(c // ct_s, n, hw // hw_s),
        in_specs=[pl.BlockSpec((None, ct_s, hw_s),
                               lambda ci, ni, hi: (ni, ci, hi))],
        out_specs=(pl.BlockSpec((ct_s, 1), lambda ci, ni, hi: (ci, 0)),
                   pl.BlockSpec((ct_s, 1), lambda ci, ni, hi: (ci, 0))),
        compiler_params=pltpu.CompilerParams(
            dimension_semantics=("parallel", "arbitrary", "arbitrary"),
            vmem_limit_bytes=_VMEM_LIMIT_BYTES),
    )(x3)

    # ---- Tiny per-channel scalar math + affine folding (C*T elements) ----
    l = float(n * hw)
    mean = sums[:, 0] / l
    var = jnp.maximum(sumsqs[:, 0] / l - mean * mean, 0.0)   # biased var (PyTorch norm)
    inv_std = lax.rsqrt(var + eps)
    scale = gammas.astype(jnp.float32) * inv_std[None, :]       # (T, C)
    shift = betas.astype(jnp.float32) - mean[None, :] * scale   # (T, C)
    scale_ct = scale.T                                          # (C, T)
    shift_ct = shift.T                                          # (C, T)

    # ---- Pass 2: out_t = x * scale_t + shift_t for all tasks in one sweep ----
    ct_a, hw_a = _pick_tiles(c, hw, itemsize, n_streams=1 + n_tasks)
    outs = pl.pallas_call(
        _make_apply_kernel(n_tasks),
        out_shape=tuple(jax.ShapeDtypeStruct((n, c, hw), x_nchw.dtype)
                        for _ in range(n_tasks)),
        grid=(c // ct_a, n, hw // hw_a),
        in_specs=[
            pl.BlockSpec((None, ct_a, hw_a), lambda ci, ni, hi: (ni, ci, hi)),
            pl.BlockSpec((ct_a, n_tasks), lambda ci, ni, hi: (ci, 0)),
            pl.BlockSpec((ct_a, n_tasks), lambda ci, ni, hi: (ci, 0)),
        ],
        out_specs=tuple(pl.BlockSpec((None, ct_a, hw_a),
                                     lambda ci, ni, hi: (ni, ci, hi))
                        for _ in range(n_tasks)),
        compiler_params=pltpu.CompilerParams(
            dimension_semantics=("parallel", "parallel", "parallel"),
            vmem_limit_bytes=_VMEM_LIMIT_BYTES),
    )(x3, scale_ct, shift_ct)

    if not isinstance(outs, (list, tuple)):
        outs = (outs,)
    return [o.reshape(n, c, h, w) for o in outs]


class BatchNorm2dRecon:
    """JAX/Pallas port of BatchNorm2d_recon (forward pass, training-mode stats)."""

    def __init__(self, num_features, n_tasks=1, key=None):
        self.n_tasks = n_tasks
        self.num_features = num_features
        if key is None:
            key = jax.random.PRNGKey(0)
        # PyTorch default init is weight=1, bias=0; perturb so the affine path
        # is exercised differently per task.
        gammas, betas = [], []
        for _ in range(n_tasks):
            kw, kb, key = jax.random.split(key, 3)
            gammas.append(1.0 + 0.1 * jax.random.normal(kw, (num_features,), jnp.float32))
            betas.append(0.1 * jax.random.normal(kb, (num_features,), jnp.float32))
        self.gammas = jnp.stack(gammas)  # (T, C)
        self.betas = jnp.stack(betas)    # (T, C)
        # TODO(synk): running_mean/running_var buffer updates (training-time side
        # effect) are not replicated; they do not affect the forward output.

    @property
    def params(self):
        return [(self.gammas[i], self.betas[i]) for i in range(self.n_tasks)]

    def __call__(self, x):
        if not isinstance(x, list):
            x = [x]
        if len(x) == 1 and self.n_tasks > 1:
            # Shared input: compute batch stats once, emit all task heads fused.
            return batch_norm2d_multi(x[0], self.gammas, self.betas)
        elif len(x) > 1 and self.n_tasks == 1:
            out = []
            for x_i in x:
                out.extend(batch_norm2d_multi(x_i, self.gammas[:1], self.betas[:1]))
            return out
        elif len(x) == self.n_tasks:
            out = []
            for i, x_i in enumerate(x):
                out.extend(batch_norm2d_multi(x_i, self.gammas[i:i + 1],
                                              self.betas[i:i + 1]))
            return out
        else:
            raise ValueError('Error')


def _reference_bn(x_nchw, gamma, beta, eps=1e-5):
    mean = jnp.mean(x_nchw, axis=(0, 2, 3), keepdims=True)
    var = jnp.mean((x_nchw - mean) ** 2, axis=(0, 2, 3), keepdims=True)
    g = gamma.reshape(1, -1, 1, 1)
    b = beta.reshape(1, -1, 1, 1)
    return (x_nchw - mean) / jnp.sqrt(var + eps) * g + b


if __name__ == "__main__":
    key = jax.random.PRNGKey(0)
    kx, kp = jax.random.split(key)

    N, C, H, W = 2, 4, 16, 16
    x = jax.random.normal(kx, (N, C, H, W), jnp.float32) * 2.0 + 0.5

    n_tasks = 2
    module = BatchNorm2dRecon(num_features=C, n_tasks=n_tasks, key=kp)

    outs = module(x)  # single input, n_tasks > 1 -> list of n_tasks outputs
    outs = [jax.block_until_ready(o) for o in outs]

    ok = True
    for (gamma, beta), o in zip(module.params, outs):
        ref = _reference_bn(x, gamma, beta)
        if not jnp.allclose(o, ref, atol=1e-4, rtol=1e-4):
            ok = False

    if ok and len(outs) == n_tasks and all(o.shape == (N, C, H, W) for o in outs):
        print("KERNEL_OK")
    else:
        print("KERNEL_MISMATCH")
</pallas_src>

<mosaic_0001>
module attributes {stable_mosaic.version = 11 : i64} {
  func.func @_bn_stats_kernel(%arg0: i32, %arg1: i32, %arg2: i32, %arg3: memref<1x4x256xf32, #tpu.memory_space<vmem>>, %arg4: memref<4x1xf32, #tpu.memory_space<vmem>>, %arg5: memref<4x1xf32, #tpu.memory_space<vmem>>) attributes {dimension_semantics = [#tpu.dimension_semantics<parallel>, #tpu.dimension_semantics<arbitrary>, #tpu.dimension_semantics<arbitrary>], iteration_bounds = array<i64: 1, 2, 1>, scalar_prefetch = 0 : i64, scratch_operands = 0 : i64, tpu.core_type = #tpu.core_type<tc>, window_params = [{transform_indices = @transform_0, window_bounds = array<i64: 1, 4, 256>}, {transform_indices = @transform_1, window_bounds = array<i64: 4, 1>}, {transform_indices = @transform_2, window_bounds = array<i64: 4, 1>}]} {
    %c0_i32 = arith.constant 0 : i32
    %0 = arith.cmpi eq, %arg1, %c0_i32 : i32
    %c0_i32_0 = arith.constant 0 : i32
    %1 = arith.cmpi eq, %arg2, %c0_i32_0 : i32
    %2 = arith.andi %0, %1 : i1
    %c0 = arith.constant 0 : index
    %c0_1 = arith.constant 0 : index
    %c0_2 = arith.constant 0 : index
    %3 = vector.load %arg3[%c0, %c0_1, %c0_2] : memref<1x4x256xf32, #tpu.memory_space<vmem>>, vector<1x4x256xf32>
    %4 = vector.shape_cast %3 : vector<1x4x256xf32> to vector<4x256xf32>
    %cst = arith.constant dense<0.000000e+00> : vector<4xf32>
    %5 = vector.multi_reduction <add>, %4, %cst [1] : vector<4x256xf32> to vector<4xf32>
    %6 = vector.shape_cast %5 : vector<4xf32> to vector<4x1xf32>
    %7 = arith.mulf %4, %4 : vector<4x256xf32>
    %cst_3 = arith.constant dense<0.000000e+00> : vector<4xf32>
    %8 = vector.multi_reduction <add>, %7, %cst_3 [1] : vector<4x256xf32> to vector<4xf32>
    %9 = vector.shape_cast %8 : vector<4xf32> to vector<4x1xf32>
    %10 = arith.extui %2 : i1 to i32
    %c0_i32_4 = arith.constant 0 : i32
    %11 = arith.cmpi ne, %10, %c0_i32_4 : i32
    scf.if %11 {
      %c0_6 = arith.constant 0 : index
      %c0_7 = arith.constant 0 : index
      %15 = vector.load %arg4[%c0_6, %c0_7] : memref<4x1xf32, #tpu.memory_space<vmem>>, vector<4x1xf32>
      tpu.vector_store %arg4[%c0_6, %c0_7], %6 {strides = array<i32>} : memref<4x1xf32, #tpu.memory_space<vmem>>, vector<4x1xf32>,
      %c0_8 = arith.constant 0 : index
      %c0_9 = arith.constant 0 : index
      %16 = vector.load %arg5[%c0_8, %c0_9] : memref<4x1xf32, #tpu.memory_space<vmem>>, vector<4x1xf32>
      tpu.vector_store %arg5[%c0_8, %c0_9], %9 {strides = array<i32>} : memref<4x1xf32, #tpu.memory_space<vmem>>, vector<4x1xf32>,
    } else {
    }
    %true = arith.constant true
    %12 = arith.xori %2, %true : i1
    %13 = arith.extui %12 : i1 to i32
    %c0_i32_5 = arith.constant 0 : i32
    %14 = arith.cmpi ne, %13, %c0_i32_5 : i32
    scf.if %14 {
      %c0_6 = arith.constant 0 : index
      %c0_7 = arith.constant 0 : index
      %15 = vector.load %arg4[%c0_6, %c0_7] : memref<4x1xf32, #tpu.memory_space<vmem>>, vector<4x1xf32>
      %16 = arith.addf %15, %6 : vector<4x1xf32>
      %c0_8 = arith.constant 0 : index
      %c0_9 = arith.constant 0 : index
      %17 = vector.load %arg4[%c0_8, %c0_9] : memref<4x1xf32, #tpu.memory_space<vmem>>, vector<4x1xf32>
      tpu.vector_store %arg4[%c0_8, %c0_9], %16 {strides = array<i32>} : memref<4x1xf32, #tpu.memory_space<vmem>>, vector<4x1xf32>,
      %c0_10 = arith.constant 0 : index
      %c0_11 = arith.constant 0 : index
      %18 = vector.load %arg5[%c0_10, %c0_11] : memref<4x1xf32, #tpu.memory_space<vmem>>, vector<4x1xf32>
      %19 = arith.addf %18, %9 : vector<4x1xf32>
      %c0_12 = arith.constant 0 : index
      %c0_13 = arith.constant 0 : index
      %20 = vector.load %arg5[%c0_12, %c0_13] : memref<4x1xf32, #tpu.memory_space<vmem>>, vector<4x1xf32>
      tpu.vector_store %arg5[%c0_12, %c0_13], %19 {strides = array<i32>} : memref<4x1xf32, #tpu.memory_space<vmem>>, vector<4x1xf32>,
    } else {
    }
    return
  }
  func.func @transform_0(%arg0: i32, %arg1: i32, %arg2: i32) -> (i32, i32, i32) {
    %c0_i32 = arith.constant 0 : i32
    return %arg1, %arg0, %arg2 : i32, i32, i32
  }
  func.func @transform_1(%arg0: i32, %arg1: i32, %arg2: i32) -> (i32, i32) {
    %c0_i32 = arith.constant 0 : i32
    %c0_i32_0 = arith.constant 0 : i32
    return %arg0, %c0_i32 : i32, i32
  }
  func.func @transform_2(%arg0: i32, %arg1: i32, %arg2: i32) -> (i32, i32) {
    %c0_i32 = arith.constant 0 : i32
    %c0_i32_0 = arith.constant 0 : i32
    return %arg0, %c0_i32 : i32, i32
  }
}

module attributes {stable_mosaic.version = 11 : i64} {
  func.func @kernel(%arg0: i32, %arg1: i32, %arg2: i32, %arg3: memref<1x4x256xf32, #tpu.memory_space<vmem>>, %arg4: memref<4x2xf32, #tpu.memory_space<vmem>>, %arg5: memref<4x2xf32, #tpu.memory_space<vmem>>, %arg6: memref<1x4x256xf32, #tpu.memory_space<vmem>>, %arg7: memref<1x4x256xf32, #tpu.memory_space<vmem>>) attributes {dimension_semantics = [#tpu.dimension_semantics<parallel>, #tpu.dimension_semantics<parallel>, #tpu.dimension_semantics<parallel>], iteration_bounds = array<i64: 1, 2, 1>, scalar_prefetch = 0 : i64, scratch_operands = 0 : i64, tpu.core_type = #tpu.core_type<tc>, window_params = [{transform_indices = @transform_0, window_bounds = array<i64: 1, 4, 256>}, {transform_indices = @transform_1, window_bounds = array<i64: 4, 2>}, {transform_indices = @transform_2, window_bounds = array<i64: 4, 2>}, {transform_indices = @transform_3, window_bounds = array<i64: 1, 4, 256>}, {transform_indices = @transform_4, window_bounds = array<i64: 1, 4, 256>}]} {
    %c0 = arith.constant 0 : index
    %c0_0 = arith.constant 0 : index
    %c0_1 = arith.constant 0 : index
    %0 = vector.load %arg3[%c0, %c0_0, %c0_1] : memref<1x4x256xf32, #tpu.memory_space<vmem>>, vector<1x4x256xf32>
    %1 = vector.shape_cast %0 : vector<1x4x256xf32> to vector<4x256xf32>
    %c0_2 = arith.constant 0 : index
    %c0_3 = arith.constant 0 : index
    %2 = vector.load %arg4[%c0_2, %c0_3] : memref<4x2xf32, #tpu.memory_space<vmem>>, vector<4x2xf32>
    %c0_4 = arith.constant 0 : index
    %c0_5 = arith.constant 0 : index
    %3 = vector.load %arg5[%c0_4, %c0_5] : memref<4x2xf32, #tpu.memory_space<vmem>>, vector<4x2xf32>
    %4 = vector.extract_strided_slice %2 {offsets = [0, 0], sizes = [4, 1], strides = [1, 1]} : vector<4x2xf32> to vector<4x1xf32>
    %5 = vector.broadcast %4 : vector<4x1xf32> to vector<4x256xf32>
    %6 = arith.mulf %1, %5 : vector<4x256xf32>
    %7 = vector.extract_strided_slice %3 {offsets = [0, 0], sizes = [4, 1], strides = [1, 1]} : vector<4x2xf32> to vector<4x1xf32>
    %8 = vector.broadcast %7 : vector<4x1xf32> to vector<4x256xf32>
    %9 = arith.addf %6, %8 : vector<4x256xf32>
    %c0_6 = arith.constant 0 : index
    %c0_7 = arith.constant 0 : index
    %c0_8 = arith.constant 0 : index
    %10 = vector.load %arg6[%c0_6, %c0_7, %c0_8] : memref<1x4x256xf32, #tpu.memory_space<vmem>>, vector<1x4x256xf32>
    %11 = vector.shape_cast %10 : vector<1x4x256xf32> to vector<4x256xf32>
    %12 = vector.shape_cast %9 : vector<4x256xf32> to vector<1x4x256xf32>
    tpu.vector_store %arg6[%c0_6, %c0_7, %c0_8], %12 {strides = array<i32>} : memref<1x4x256xf32, #tpu.memory_space<vmem>>, vector<1x4x256xf32>,
    %13 = vector.extract_strided_slice %2 {offsets = [0, 1], sizes = [4, 1], strides = [1, 1]} : vector<4x2xf32> to vector<4x1xf32>
    %14 = vector.broadcast %13 : vector<4x1xf32> to vector<4x256xf32>
    %15 = arith.mulf %1, %14 : vector<4x256xf32>
    %16 = vector.extract_strided_slice %3 {offsets = [0, 1], sizes = [4, 1], strides = [1, 1]} : vector<4x2xf32> to vector<4x1xf32>
    %17 = vector.broadcast %16 : vector<4x1xf32> to vector<4x256xf32>
    %18 = arith.addf %15, %17 : vector<4x256xf32>
    %c0_9 = arith.constant 0 : index
    %c0_10 = arith.constant 0 : index
    %c0_11 = arith.constant 0 : index
    %19 = vector.load %arg7[%c0_9, %c0_10, %c0_11] : memref<1x4x256xf32, #tpu.memory_space<vmem>>, vector<1x4x256xf32>
    %20 = vector.shape_cast %19 : vector<1x4x256xf32> to vector<4x256xf32>
    %21 = vector.shape_cast %18 : vector<4x256xf32> to vector<1x4x256xf32>
    tpu.vector_store %arg7[%c0_9, %c0_10, %c0_11], %21 {strides = array<i32>} : memref<1x4x256xf32, #tpu.memory_space<vmem>>, vector<1x4x256xf32>,
    return
  }
  func.func @transform_0(%arg0: i32, %arg1: i32, %arg2: i32) -> (i32, i32, i32) {
    %c0_i32 = arith.constant 0 : i32
    return %arg1, %arg0, %arg2 : i32, i32, i32
  }
  func.func @transform_1(%arg0: i32, %arg1: i32, %arg2: i32) -> (i32, i32) {
    %c0_i32 = arith.constant 0 : i32
    %c0_i32_0 = arith.constant 0 : i32
    return %arg0, %c0_i32 : i32, i32
  }
  func.func @transform_2(%arg0: i32, %arg1: i32, %arg2: i32) -> (i32, i32) {
    %c0_i32 = arith.constant 0 : i32
    %c0_i32_0 = arith.constant 0 : i32
    return %arg0, %c0_i32 : i32, i32
  }
  func.func @transform_3(%arg0: i32, %arg1: i32, %arg2: i32) -> (i32, i32, i32) {
    %c0_i32 = arith.constant 0 : i32
    return %arg1, %arg0, %arg2 : i32, i32, i32
  }
  func.func @transform_4(%arg0: i32, %arg1: i32, %arg2: i32) -> (i32, i32, i32) {
    %c0_i32 = arith.constant 0 : i32
    return %arg1, %arg0, %arg2 : i32, i32, i32
  }
}

</mosaic_0001>

<bundles_post_ra>
// kernel: batch_norm2d_multi.2
= control target key start
LH: loop header
LB: loop body
LE: loop exit
PB: predicated region body
PF: predicated region fallthrough
CT: control target
= control target key end

     0   :  { %s424_s9 = smov 0   ;;  %s426_s10 = smov 0   ;;  %s481_s0 = inlined_call_operand.vmem [shape: f32[2,4,256], index: 0, kind: input, shape index: {}]   ;;  %s482_s1 = inlined_call_operand.vmem [shape: f32[4,1], index: 1, kind: output, shape index: {0}]   ;;  %s483_s2 = inlined_call_operand.vmem [shape: f32[4,1], index: 2, kind: output, shape index: {1}]  }
   0x1   :  { %s428_s11 = smov 0  }
   0x2 LB: > { %s28_s12 = sadd.s32 1, %s403_s10  ;;  %p351_p0 = scmp.ge.s32.totalorder %s407_s11, 1  ;;  %s407_s11 = sphi %s428_s11, %s13_s11   ;;  %s403_s10 = sphi %s426_s10, %s485_s10   ;;  %s399_s9 = sphi %s424_s9, %s484_s9  }
   0x3   : > { %p30_p1 = scmp.ge.s32.totalorder %s28_s12, 2  ;;  %p147_p2 = scmp.lt.s32.totalorder %s407_s11, 3 }
   0x5   : > { %s487_s12 = smov (%p30_p1, %s28_s12), 0  ;;  %p148_p3 = pnand %p351_p0, %p147_p2 }
   0x6   : > { %p181_p4 = scmp.lt.s32.totalorder (!%p148_p3), %s399_s9, 1  ;;  %p202_p5 = scmp.eq.s32.totalorder (!%p148_p3), %s399_s9, 0 }
   0x7   : > { %151 = sbr.rel (%p148_p3) target bundleno = 163 (0xa3), region = 24 }
   0xc   : > { %s182_s13 = scalar_select %p181_p4, %s399_s9, 1  ;;  %vm213_vm0 = vcmask 1043456   ;;  %vm233_vm1 = vcmask (%p202_p5), 3072  }
   0xe   : > { %s359_s14 = sshll.u32 %s182_s13, 3 }
   0xf   : > { %s192_s17 = scalar_lea.vmem %s481_s0, %s359_s14 }
  0x10   : > { %v206_v0 = vld [vmem:[%s192_s17] sm:$0xff] }
  0x11   : > { %208 = vst [vmem:[#allocation1] ss:$2 sm:$0xff] %v206_v0  ;;  %v219_v1 = vmul.f32 %v206_v0, %v206_v0 }
  0x18   : > { %v209_v2 = vld.sshfl [vmem:[#allocation1] sm:$0xff pattern:$0x75316420]  ;;  %v210_v3 = vld.sshfl [vmem:[#allocation1 + $0x8] sm:$0xff pattern:$0x75316420] }
  0x19   : > { %v214_v4 = vsel %vm213_vm0, %v209_v2, 0.0  ;;  %v215_v5 = vsel %vm213_vm0, %v210_v3, 0.0  ;;  %221 = vst [vmem:[#allocation1] ss:$2 sm:$0xff] %v219_v1 }
  0x1a   : > { %v216_v6 = vadd.f32 %v215_v5, %v214_v4 }
  0x1c   : > { %217 = vadd.xlane.f32.xlu0 %v216_v6 }
  0x20   : > { %v222_v7 = vld.sshfl [vmem:[#allocation1] sm:$0xff pattern:$0x75316420]  ;;  %v223_v8 = vld.sshfl [vmem:[#allocation1 + $0x8] sm:$0xff pattern:$0x75316420] }
  0x21   : > { %v226_v9 = vsel %vm213_vm0, %v222_v7, 0.0  ;;  %v227_v10 = vsel %vm213_vm0, %v223_v8, 0.0 }
  0x22   : > { %v228_v11 = vadd.f32 %v227_v10, %v226_v9 }
  0x24   : > { %229 = vadd.xlane.f32.xlu0 %v228_v11 }
  0x8f   : > { %v218_v12 = vpop.xlane.xlu0 %217 }
  0x90   : > { %234 = vst.msk [vmem:[%s482_s1] sm:$0xf] (%p202_p5), %vm233_vm1, %v218_v12 }
  0x93   : > { %232 = sbr.rel (!%p202_p5) target bundleno = 153 (0x99), region = 28 }
  0x97   : > { %v230_v13 = vpop.xlane.xlu0 %229 }
  0x98   : > { %235 = vst.msk [vmem:[%s483_s2] sm:$0xf] %vm233_vm1, %v230_v13 }
  0x99 PF: > { %238 = sbr.rel (%p202_p5) target bundleno = 163 (0xa3), region = 32 }
  0x9e   : > { %v239_v14 = vld [vmem:[%s482_s1] sm:$0xf]  ;;  %vm241_vm2 = vcmask 3072  }
  0x9f   : > { %v243_v15 = vld [vmem:[%s483_s2] sm:$0xf]  ;;  %v240_v16 = vadd.f32 %v239_v14, %v218_v12 }
  0xa0   : > { %v244_v17 = vadd.f32 %v243_v15, %v230_v13 }
  0xa1   : > { %242 = vst.msk [vmem:[%s482_s1] sm:$0xf] %vm241_vm2, %v240_v16 }
  0xa2   : > { %245 = vst.msk [vmem:[%s483_s2] sm:$0xf] %vm241_vm2, %v244_v17 }
  0xa3 PF: > { %s13_s11 = sadd.s32 1, %s407_s11   ;;  %s484_s9 = smov %s403_s10 }
  0xa4   : > { %p10_p6 = scmp.ge.s32.totalorder %s13_s11, 4   ;;  %s485_s10 = smov %s487_s12 }
  0xa6   :  { %12 = sbr.rel (!%p10_p6) target bundleno = 2 (0x2), region = 74 }

// kernel: batch_norm2d_multi.3
= control target key start
LH: loop header
LB: loop body
LE: loop exit
PB: predicated region body
PF: predicated region fallthrough
CT: control target
= control target key end

     0   :  { %s688_s15 = smov 0   ;;  %s690_s16 = smov 0   ;;  %s730_s0 = inlined_call_operand.vmem [shape: f32[2,4,256], index: 0, kind: input, shape index: {}]   ;;  %s731_s1 = inlined_call_operand.vmem [shape: f32[4,2], index: 1, kind: input, shape index: {}]   ;;  %s732_s2 = inlined_call_operand.vmem [shape: f32[4,2], index: 2, kind: input, shape index: {}]   ;;  %s733_s3 = inlined_call_operand.vmem [shape: f32[2,4,256], index: 3, kind: output, shape index: {0}]   ;;  %s734_s4 = inlined_call_operand.vmem [shape: f32[2,4,256], index: 4, kind: output, shape index: {1}]  }
   0x1   :  { %s692_s17 = smov 0  }
   0x2 LB: > { %s30_s18 = sadd.s32 1, %s654_s16  ;;  %p593_p0 = scmp.ge.s32.totalorder %s658_s17, 1  ;;  %s658_s17 = sphi %s692_s17, %s15_s17   ;;  %s654_s16 = sphi %s690_s16, %s736_s16   ;;  %s650_s15 = sphi %s688_s15, %s735_s15  }
   0x3   : > { %p32_p1 = scmp.ge.s32.totalorder %s30_s18, 2  ;;  %p223_p2 = scmp.lt.s32.totalorder %s658_s17, 3 }
   0x5   : > { %s738_s18 = smov (%p32_p1, %s30_s18), 0  ;;  %p224_p3 = pnand %p593_p0, %p223_p2 }
   0x6   : > { %p287_p4 = scmp.lt.s32.totalorder (!%p224_p3), %s650_s15, 1 }
   0x7   : > { %227 = sbr.rel (%p224_p3) target bundleno = 145 (0x91), region = 32 }
   0xc   : > { %v337_v0 = vld [vmem:[%s731_s1] sm:$0xf]  ;;  %v660_v2 = vmov 0   ;;  %v661_v3 = vmov 1   ;;  %s740_s15 = smov (!%p287_p4, %s650_s15), 1 }
   0xd   : > { %v338_v1 = vld [vmem:[%s732_s2] sm:$0xf]  ;;  %632 = vset.pattern.permute.xlu0 %v660_v2  ;;  %634 = vset.pattern.permute.xlu1 %v660_v2  ;;  %v662_v4 = vmov 839922192   ;;  %s602_s23 = sshll.u32 %s740_s15, 3 }
   0xe   : > { %341 = vperm.xlu0 %632, %v337_v0   ;;  %351 = vperm.xlu1 %634, %v338_v1   ;;  %v344_v5 = vunpack.c.l.s4 %v662_v4  ;;  %s298_s26 = scalar_lea.vmem %s730_s0, %s602_s23  ;;  %s320_s29 = scalar_lea.vmem %s733_s3, %s602_s23 }
   0xf   : > { %v336_v8 = vld [vmem:[%s298_s26] sm:$0xff]  ;;  %s334_s6 = scalar_lea.vmem %s734_s4, %s602_s23 }
  0x10   : > { %v345_v6 = vunpack.c.0.s8 %v344_v5 }
  0x16   : > { %633 = vset.pattern.permute.xlu0 %v661_v3  ;;  %635 = vset.pattern.permute.xlu1 %v661_v3 }
  0x17   : > { %361 = vperm.xlu0 %633, %v337_v0   ;;  %370 = vperm.xlu1 %635, %v338_v1  }
  0x80   : > { %v342_v7 = vpop.permute.xlu0 %341  ;;  %v352_v9 = vpop.permute.xlu1 %351 }
  0x81   : > { %v346_v10 = vperm.slane %v342_v7, %v345_v6  ;;  %v356_v11 = vperm.slane %v352_v9, %v345_v6 }
  0x83   : > { %v348_v12 = vmul.f32 %v346_v10, %v336_v8 }
  0x85   : > { %v358_v13 = vadd.f32 %v356_v11, %v348_v12 }
  0x87   : > { %359 = vst [vmem:[%s320_s29] sm:$0xff] %v358_v13 }
  0x89   : > { %v362_v14 = vpop.permute.xlu0 %361  ;;  %v371_v15 = vpop.permute.xlu1 %370 }
  0x8a   : > { %v366_v16 = vperm.slane %v362_v14, %v345_v6  ;;  %v375_v17 = vperm.slane %v371_v15, %v345_v6 }
  0x8c   : > { %v368_v18 = vmul.f32 %v366_v16, %v336_v8 }
  0x8e   : > { %v377_v19 = vadd.f32 %v375_v17, %v368_v18 }
  0x90   : > { %378 = vst [vmem:[%s334_s6] sm:$0xff] %v377_v19 }
  0x91 PF: > { %s15_s17 = sadd.s32 1, %s658_s17   ;;  %s735_s15 = smov %s654_s16 }
  0x92   : > { %p12_p5 = scmp.ge.s32.totalorder %s15_s17, 4   ;;  %s736_s16 = smov %s738_s18 }
  0x94   :  { %14 = sbr.rel (!%p12_p5) target bundleno = 2 (0x2), region = 80 }

</bundles_post_ra>
